<compile_context>
chip_gen: v7x
topology: tpu7x:2x2x1
jax: 0.10.0
libtpu: 0.0.40
codegen_flags: <defaults>
</compile_context>

<pallas_src>
import functools

import jax
import jax.numpy as jnp
from jax.experimental import pallas as pl
from jax.experimental.pallas import tpu as pltpu


def _cdiv(a, b):
    return -(-a // b)


# ----------------------------------------------------------------------------
# Pallas kernel: fused bmm + ReLU + L2 normalisation
# ----------------------------------------------------------------------------
def _corr_kernel(src_ref, tgt_ref, o_ref, *, normalization, norm_over_source):
    # src_ref: (1, Ns, C)  tgt_ref: (1, C, tnt)  o_ref: (1, Ns, tnt)
    s = src_ref[0]                                            # (Ns, C)  bf16
    t = tgt_ref[0]                                            # (C, tnt) bf16
    m = jnp.dot(s, t, preferred_element_type=jnp.float32)     # MXU, f32 acc
    if normalization:
        m = jnp.maximum(m, 0.0)                               # ReLU
        if norm_over_source:
            # featureL2Norm over source positions (axis 0).  The full Ns axis
            # is resident in this block, so the reduction is block-local and
            # per target column (padding columns of a partial last tile never
            # contaminate valid columns).
            denom_sq = jnp.sum(m * m, axis=0, keepdims=True) + 1e-6
        else:
            # 4D case: channel dim has size 1 -> elementwise normalisation.
            denom_sq = m * m + 1e-6
        m = m * jax.lax.rsqrt(denom_sq)                       # EUP rsqrt (cheap)
    o_ref[0] = m.astype(o_ref.dtype)


# ----------------------------------------------------------------------------
# VMEM budgeting / tile selection (generation aware)
# ----------------------------------------------------------------------------
def _vmem_budget_bytes():
    """Returns (tile budget, physical VMEM capacity) in bytes."""
    cap = 64 * 1024 * 1024                      # conservative fallback (= v7x)
    try:
        cap = int(pltpu.get_tpu_info().vmem_capacity_bytes)
    except Exception:
        pass
    # Leave headroom for compiler-internal scratch / pipeline bookkeeping.
    budget = max(12 * 1024 * 1024, min((cap * 3) // 4, 96 * 1024 * 1024))
    return budget, cap


def _block_need_bytes(ns, c, tnt, in_itemsize, out_itemsize):
    """VMEM footprint of one grid step (all pipeline buffers + f32 matmul temp)."""
    src = 2 * ns * c * in_itemsize        # double-buffered src block
    tgt = 2 * c * tnt * in_itemsize       # double-buffered tgt tile
    out = 2 * ns * tnt * out_itemsize     # double-buffered output tile
    tmp = ns * tnt * 4                    # f32 dot result before ReLU/norm/cast
    return src + tgt + out + tmp


def _pick_target_tile(nt, ns, c, in_itemsize, out_itemsize, budget, batch):
    """Largest lane-dense tile width over target positions fitting the budget."""
    if nt <= 128:
        return nt                         # full extent is the only legal block
    # Prefer multiples of 256 (v6e/v7x 2x256x256 MXU); keep 128 granularity as
    # fallback (v5e MXU / tight VMEM).  Nt need not be divisible: the grid uses
    # cdiv and Pallas masks the partial last tile.
    cands = sorted({t for t in (4096, 3072, 2048, 1536, 1024, 768, 512, 384,
                                256, 128) if t <= nt}, reverse=True)
    tnt = 128
    for t in cands:
        if _block_need_bytes(ns, c, t, in_itemsize, out_itemsize) <= budget:
            tnt = t
            break
    # v7x has 2 TensorCores; when batch == 1 keep >= 2 target tiles so both
    # cores get work (costs ~0.35us of per-step overhead, recovers ~2x).
    if batch == 1 and _cdiv(nt, tnt) < 2:
        half = _cdiv(_cdiv(nt, 2), 128) * 128
        tnt = max(128, min(tnt, half))
    return tnt


# ----------------------------------------------------------------------------
# pallas_call wrapper
# ----------------------------------------------------------------------------
def _corr_pallas(src_bnc, tgt_bcn, normalization, norm_over_source, out_dtype):
    """Per-batch relu/L2norm(src @ tgt).

    src_bnc: (B, Ns, C), tgt_bcn: (B, C, Nt)  ->  (B, Ns, Nt) out_dtype
    """
    b, ns, c = src_bnc.shape
    _, _, nt = tgt_bcn.shape
    in_item = jnp.dtype(src_bnc.dtype).itemsize
    out_item = jnp.dtype(out_dtype).itemsize

    budget, cap = _vmem_budget_bytes()
    tnt = _pick_target_tile(nt, ns, c, in_item, out_item, budget, b)
    grid = (b, _cdiv(nt, tnt))

    need = _block_need_bytes(ns, c, tnt, in_item, out_item)
    # Match (and slightly exceed) the computed footprint, never below a sane
    # floor, never above physical VMEM.
    vmem_limit = int(min(max(need + (4 << 20), 32 << 20), cap))

    kernel = functools.partial(_corr_kernel,
                               normalization=normalization,
                               norm_over_source=norm_over_source)
    return pl.pallas_call(
        kernel,
        out_shape=jax.ShapeDtypeStruct((b, ns, nt), out_dtype),
        grid_spec=pltpu.PrefetchScalarGridSpec(
            num_scalar_prefetch=0,
            grid=grid,
            in_specs=[
                # src: constant over the ti axis -> fetched once per batch.
                pl.BlockSpec((1, ns, c), lambda bi, ti: (bi, 0, 0)),
                pl.BlockSpec((1, c, tnt), lambda bi, ti: (bi, 0, ti)),
            ],
            out_specs=pl.BlockSpec((1, ns, tnt), lambda bi, ti: (bi, 0, ti)),
        ),
        compiler_params=pltpu.CompilerParams(
            dimension_semantics=("parallel", "parallel"),
            vmem_limit_bytes=vmem_limit),
    )(src_bnc, tgt_bcn)


# ----------------------------------------------------------------------------
# FeatureCorrelation forward (JAX glue around the Pallas hot path)
# ----------------------------------------------------------------------------
def feature_correlation(feature_source, feature_target, shape='3D',
                        normalization=True,
                        compute_dtype=jnp.bfloat16,   # MXU input dtype
                        out_dtype=jnp.float32):       # bf16 halves writeback
    if shape == '3D':
        b, c, h, w = feature_source.shape
        # source flattened w-major (== .transpose(2,3).view(b,c,h*w)),
        # channels-last so the kernel does a clean (Ns, C) @ (C, Nt) matmul.
        src = jnp.transpose(feature_source, (0, 3, 2, 1)).reshape(b, w * h, c)
        # target flattened h-major (== .view(b,c,h*w))
        tgt = feature_target.reshape(b, c, h * w)
        corr = _corr_pallas(src.astype(compute_dtype), tgt.astype(compute_dtype),
                            normalization, True, out_dtype)
        # (b, Ns, Nt) -> (b, h*w, h, w): already matches
        # view(b,h,w,h*w).transpose(2,3).transpose(1,2) — no big HBM transpose.
        return corr.reshape(b, h * w, h, w)
    elif shape == '4D':
        b, c, hs, ws = feature_source.shape
        _, _, ht, wt = feature_target.shape
        src = jnp.transpose(feature_source.reshape(b, c, hs * ws), (0, 2, 1))
        tgt = feature_target.reshape(b, c, ht * wt)
        corr = _corr_pallas(src.astype(compute_dtype), tgt.astype(compute_dtype),
                            normalization, False, out_dtype)
        return corr.reshape(b, hs, ws, ht, wt)[:, None]
    raise ValueError(f"unknown shape mode: {shape}")


# ----------------------------------------------------------------------------
# Pure-JAX reference (mirrors the PyTorch code literally)
# ----------------------------------------------------------------------------
def _reference_feature_correlation(fs, ft, shape='3D', normalization=True):
    hi = jax.lax.Precision.HIGHEST
    if shape == '3D':
        b, c, h, w = fs.shape
        src = jnp.transpose(fs, (0, 1, 3, 2)).reshape(b, c, h * w)
        tgt = jnp.transpose(ft.reshape(b, c, h * w), (0, 2, 1))
        mul = jnp.einsum('bnc,bcm->bnm', tgt, src, precision=hi)
        corr = jnp.transpose(mul.reshape(b, h, w, h * w), (0, 3, 1, 2))
    else:
        b, c, hs, ws = fs.shape
        _, _, ht, wt = ft.shape
        src = jnp.transpose(fs.reshape(b, c, hs * ws), (0, 2, 1))
        tgt = ft.reshape(b, c, ht * wt)
        mul = jnp.einsum('bnc,bcm->bnm', src, tgt, precision=hi)
        corr = mul.reshape(b, hs, ws, ht, wt)[:, None]
    if normalization:
        corr = jnp.maximum(corr, 0.0)
        norm = jnp.sqrt(jnp.sum(corr * corr, axis=1, keepdims=True) + 1e-6)
        corr = corr / norm
    return corr


# ----------------------------------------------------------------------------
if __name__ == "__main__":
    key = jax.random.PRNGKey(0)
    k1, k2, k3 = jax.random.split(key, 3)

    b, c, h, w = 2, 128, 16, 16
    feat_src = jax.random.normal(k1, (b, c, h, w), jnp.float32)
    feat_tgt = jax.random.normal(k2, (b, c, h, w), jnp.float32)

    # The kernel feeds bf16 to the MXU (perf review #5).  For tight layout /
    # fusion validation the reference sees identically-quantised inputs
    # (bf16 products are exact in f32, so only summation order differs).
    q = lambda x: x.astype(jnp.bfloat16).astype(jnp.float32)

    # --- 3D mode (module default), normalization=True ---
    fwd3d = jax.jit(functools.partial(feature_correlation,
                                      shape='3D', normalization=True))
    out3d = jax.block_until_ready(fwd3d(feat_src, feat_tgt))
    assert out3d.shape == (b, h * w, h, w)
    ref3d = _reference_feature_correlation(q(feat_src), q(feat_tgt), '3D', True)
    assert jnp.allclose(out3d, ref3d, rtol=1e-3, atol=1e-3), "3D mismatch"
    # Loose end-to-end check against the full-f32 reference (bf16 MXU rounding).
    ref3d_f32 = _reference_feature_correlation(feat_src, feat_tgt, '3D', True)
    assert jnp.allclose(out3d, ref3d_f32, rtol=5e-2, atol=5e-3), "3D f32 mismatch"

    # --- 4D mode, raw correlation (tight check of matmul + layout) ---
    ht4, wt4 = 8, 16
    feat_tgt4 = jax.random.normal(k3, (b, c, ht4, wt4), jnp.float32)
    fwd4d_raw = jax.jit(functools.partial(feature_correlation,
                                          shape='4D', normalization=False))
    out4d_raw = jax.block_until_ready(fwd4d_raw(feat_src, feat_tgt4))
    assert out4d_raw.shape == (b, 1, h, w, ht4, wt4)
    ref4d_raw = _reference_feature_correlation(q(feat_src), q(feat_tgt4), '4D', False)
    assert jnp.allclose(out4d_raw, ref4d_raw, rtol=1e-3, atol=1e-2), "4D raw mismatch"

    # --- 4D mode, normalized (eps=1e-6 channel-norm is ill-conditioned near 0,
    #     so allow a looser absolute tolerance) ---
    fwd4d = jax.jit(functools.partial(feature_correlation,
                                      shape='4D', normalization=True))
    out4d = jax.block_until_ready(fwd4d(feat_src, feat_tgt4))
    ref4d = _reference_feature_correlation(q(feat_src), q(feat_tgt4), '4D', True)
    assert jnp.allclose(out4d, ref4d, rtol=1e-2, atol=5e-2), "4D norm mismatch"

    print("KERNEL_OK")
</pallas_src>

<mosaic_0001>
module attributes {stable_mosaic.version = 11 : i64} {
  func.func @_corr_kernel(%arg0: i32, %arg1: i32, %arg2: memref<1x256x128xbf16, #tpu.memory_space<vmem>>, %arg3: memref<1x128x256xbf16, #tpu.memory_space<vmem>>, %arg4: memref<1x256x256xf32, #tpu.memory_space<vmem>>) attributes {dimension_semantics = [#tpu.dimension_semantics<parallel>, #tpu.dimension_semantics<parallel>], iteration_bounds = array<i64: 2, 1>, scalar_prefetch = 0 : i64, scratch_operands = 0 : i64, tpu.core_type = #tpu.core_type<tc>, window_params = [{transform_indices = @transform_0, window_bounds = array<i64: 1, 256, 128>}, {transform_indices = @transform_1, window_bounds = array<i64: 1, 128, 256>}, {transform_indices = @transform_2, window_bounds = array<i64: 1, 256, 256>}]} {
    %c0 = arith.constant 0 : index
    %c0_0 = arith.constant 0 : index
    %c0_1 = arith.constant 0 : index
    %0 = vector.load %arg2[%c0, %c0_0, %c0_1] : memref<1x256x128xbf16, #tpu.memory_space<vmem>>, vector<1x256x128xbf16>
    %1 = vector.shape_cast %0 : vector<1x256x128xbf16> to vector<256x128xbf16>
    %c0_2 = arith.constant 0 : index
    %c0_3 = arith.constant 0 : index
    %c0_4 = arith.constant 0 : index
    %2 = vector.load %arg3[%c0_2, %c0_3, %c0_4] : memref<1x128x256xbf16, #tpu.memory_space<vmem>>, vector<1x128x256xbf16>
    %3 = vector.shape_cast %2 : vector<1x128x256xbf16> to vector<128x256xbf16>
    %cst = arith.constant dense<0.000000e+00> : vector<256x256xf32>
    %4 = tpu.matmul %1, %3, %cst {dimension_numbers = #tpu.dot_dimension_numbers<[1], [0], [0], [1], [0, 0, 1, 1], [], []>} : vector<256x128xbf16>, vector<128x256xbf16>, vector<256x256xf32> -> vector<256x256xf32>
    %cst_5 = arith.constant 0.000000e+00 : f32
    %5 = vector.broadcast %cst_5 : f32 to vector<256x256xf32>
    %6 = arith.maximumf %4, %5 : vector<256x256xf32>
    %7 = arith.mulf %6, %6 : vector<256x256xf32>
    %cst_6 = arith.constant dense<0.000000e+00> : vector<256xf32>
    %8 = vector.multi_reduction <add>, %7, %cst_6 [0] : vector<256x256xf32> to vector<256xf32>
    %9 = vector.shape_cast %8 : vector<256xf32> to vector<1x256xf32>
    %cst_7 = arith.constant 9.99999997E-7 : f32
    %10 = vector.broadcast %cst_7 : f32 to vector<1x256xf32>
    %11 = arith.addf %9, %10 : vector<1x256xf32>
    %12 = math.rsqrt %11 : vector<1x256xf32>
    %13 = vector.broadcast %12 : vector<1x256xf32> to vector<256x256xf32>
    %14 = arith.mulf %6, %13 : vector<256x256xf32>
    %c0_8 = arith.constant 0 : index
    %c0_9 = arith.constant 0 : index
    %c0_10 = arith.constant 0 : index
    %15 = vector.load %arg4[%c0_8, %c0_9, %c0_10] : memref<1x256x256xf32, #tpu.memory_space<vmem>>, vector<1x256x256xf32>
    %16 = vector.shape_cast %15 : vector<1x256x256xf32> to vector<256x256xf32>
    %17 = vector.shape_cast %14 : vector<256x256xf32> to vector<1x256x256xf32>
    tpu.vector_store %arg4[%c0_8, %c0_9, %c0_10], %17 {strides = array<i32>} : memref<1x256x256xf32, #tpu.memory_space<vmem>>, vector<1x256x256xf32>,
    return
  }
  func.func @transform_0(%arg0: i32, %arg1: i32) -> (i32, i32, i32) {
    %c0_i32 = arith.constant 0 : i32
    %c0_i32_0 = arith.constant 0 : i32
    %c0_i32_1 = arith.constant 0 : i32
    return %arg0, %c0_i32, %c0_i32_0 : i32, i32, i32
  }
  func.func @transform_1(%arg0: i32, %arg1: i32) -> (i32, i32, i32) {
    %c0_i32 = arith.constant 0 : i32
    %c0_i32_0 = arith.constant 0 : i32
    return %arg0, %c0_i32, %arg1 : i32, i32, i32
  }
  func.func @transform_2(%arg0: i32, %arg1: i32) -> (i32, i32, i32) {
    %c0_i32 = arith.constant 0 : i32
    %c0_i32_0 = arith.constant 0 : i32
    return %arg0, %c0_i32, %arg1 : i32, i32, i32
  }
}

</mosaic_0001>

<bundles_post_ra>
// kernel: feature_correlation.1
= control target key start
LH: loop header
LB: loop body
LE: loop exit
PB: predicated region body
PF: predicated region fallthrough
CT: control target
= control target key end

     0   :  { %s1227_s9 = smov 0   ;;  %s1229_s10 = smov 0   ;;  %s1835_s0 = inlined_call_operand.vmem [shape: bf16[2,256,128], index: 0, kind: input, shape index: {}]   ;;  %s1836_s1 = inlined_call_operand.vmem [shape: bf16[2,128,256], index: 1, kind: input, shape index: {}]   ;;  %s1837_s2 = inlined_call_operand.vmem [shape: f32[2,256,256], index: 2, kind: output, shape index: {}]  }
   0x1   :  { %s1231_s11 = smov 0  }
   0x2 LB: > { %s24_s12 = sadd.s32 1, %s1205_s10  ;;  %p1058_p0 = scmp.ge.s32.totalorder %s1209_s11, 1  ;;  %s1209_s11 = sphi %s1231_s11, %s12_s11   ;;  %s1205_s10 = sphi %s1229_s10, %s1902_s10   ;;  %s1201_s9 = sphi %s1227_s9, %s1901_s9  }
   0x3   : > { %p26_p1 = scmp.ge.s32.totalorder %s24_s12, 2  ;;  %p143_p2 = scmp.lt.s32.totalorder %s1209_s11, 3 }
   0x5   : > { %s1904_s12 = smov (%p26_p1, %s24_s12), 0  ;;  %p144_p3 = pnand %p1058_p0, %p143_p2 }
   0x7   : > { %147 = sbr.rel (%p144_p3) target bundleno = 420 (0x1a4), region = 28 }
   0xe   : > { %p178_p4 = scmp.lt.s32.totalorder %s1201_s9, 1  ;;  %v1211_v0 = vmov 0  }
   0xf   : > { %460 = vmatprep.mubr.bf16.mxu0 %v1211_v0  ;;  %540 = vmatprep.mubr.bf16.mxu1 %v1211_v0 }
  0x10   : > { %s1906_s9 = smov (!%p178_p4, %s1201_s9), 1 }
  0x11   : > { %s1099_s13 = sshll.u32 %s1906_s9, 7  ;;  %s1101_s20 = sshll.u32 %s1906_s9, 9 }
  0x12   : > { %s1253_s16 = scalar_lea.vmem %s1836_s1, %s1099_s13  ;;  %s1265_s19 = scalar_lea.vmem %s1835_s0, %s1099_s13 }
  0x13   : > { %v1143_v1 = vld [vmem:[%s1253_s16 + $0x4] ss:$8 sps:$4 sm:$0xff]   ;;  %v1145_v2 = vld [vmem:[%s1253_s16] ss:$8 sps:$4 sm:$0xff]   ;;  %v1146_v3 = vld [vmem:[%s1253_s16 + $0x14] ss:$8 sps:$4 sm:$0xff]   ;;  %s1662_s23 = scalar_lea.vmem %s1837_s2, %s1101_s20 }
  0x14   : > { %428 = vmatprep.subr.bf16.mxu0 %v1143_v1  ;;  %1102 = vmatprep.subr.bf16.mxu1 %v1143_v1  ;;  %v1148_v4 = vld [vmem:[%s1253_s16 + $0x10] ss:$8 sps:$4 sm:$0xff]   ;;  %v1149_v5 = vld [vmem:[%s1253_s16 + $0x24] ss:$8 sps:$4 sm:$0xff]   ;;  %v1151_v6 = vld [vmem:[%s1253_s16 + $0x20] ss:$8 sps:$4 sm:$0xff]  }
  0x15   : > { %429 = vmatpush1.bf16.msra.mxu0 %v1145_v2  ;;  %1110 = vmatpush1.bf16.msra.mxu1 %v1145_v2  ;;  %v1152_v7 = vld [vmem:[%s1253_s16 + $0x34] ss:$8 sps:$4 sm:$0xff]   ;;  %v1154_v8 = vld [vmem:[%s1253_s16 + $0x30] ss:$8 sps:$4 sm:$0xff]   ;;  %v1155_v9 = vld [vmem:[%s1253_s16 + $0x44] ss:$8 sps:$4 sm:$0xff]  }
  0x16   : > { %430 = vmatprep.subr.bf16.mxu0 %v1146_v3  ;;  %1103 = vmatprep.subr.bf16.mxu1 %v1146_v3  ;;  %v1157_v10 = vld [vmem:[%s1253_s16 + $0x40] ss:$8 sps:$4 sm:$0xff]   ;;  %v1158_v11 = vld [vmem:[%s1253_s16 + $0x54] ss:$8 sps:$4 sm:$0xff]   ;;  %v1160_v12 = vld [vmem:[%s1253_s16 + $0x50] ss:$8 sps:$4 sm:$0xff]  }
  0x17   : > { %v1161_v13 = vld [vmem:[%s1253_s16 + $0x64] ss:$8 sps:$4 sm:$0xff]   ;;  %v1163_v14 = vld [vmem:[%s1253_s16 + $0x60] ss:$8 sps:$4 sm:$0xff]   ;;  %v1164_v15 = vld [vmem:[%s1253_s16 + $0x74] ss:$8 sps:$4 sm:$0xff]  }
  0x18   : > { %v1166_v16 = vld [vmem:[%s1253_s16 + $0x70] ss:$8 sps:$4 sm:$0xff]   ;;  %v1167_v17 = vld [vmem:[%s1265_s19] sm:$0xff]   ;;  %v1168_v19 = vld [vmem:[%s1265_s19 + $0x8] sm:$0xff]  }
  0x19   : > { %431 = vmatpush1.bf16.msra.mxu0 %v1148_v4  ;;  %1111 = vmatpush1.bf16.msra.mxu1 %v1148_v4  ;;  %v1171_v18 = vld [vmem:[%s1265_s19 + $0x40] sm:$0xff]   ;;  %v1173_v20 = vld [vmem:[%s1265_s19 + $0x48] sm:$0xff]   ;;  %v1169_v21 = vld [vmem:[%s1265_s19 + $0x10] sm:$0xff]  }
  0x1a   : > { %432 = vmatprep.subr.bf16.mxu0 %v1149_v5  ;;  %1104 = vmatprep.subr.bf16.mxu1 %v1149_v5  ;;  %v1175_v22 = vld [vmem:[%s1265_s19 + $0x50] sm:$0xff]   ;;  %v1170_v23 = vld [vmem:[%s1265_s19 + $0x18] sm:$0xff]   ;;  %v1172_v25 = vld [vmem:[%s1265_s19 + $0x20] sm:$0xff]  }
  0x1b   : > { %v1177_v24 = vld [vmem:[%s1265_s19 + $0x58] sm:$0xff]   ;;  %v1179_v26 = vld [vmem:[%s1265_s19 + $0x60] sm:$0xff]   ;;  %v1174_v27 = vld [vmem:[%s1265_s19 + $0x28] sm:$0xff]  }
  0x1c   : > { %v1180_v28 = vld [vmem:[%s1265_s19 + $0x68] sm:$0xff]   ;;  %v1176_v29 = vld [vmem:[%s1265_s19 + $0x30] sm:$0xff]   ;;  %v1178_v31 = vld [vmem:[%s1265_s19 + $0x38] sm:$0xff]  }
  0x1d   : > { %433 = vmatpush1.bf16.msra.mxu0 %v1151_v6  ;;  %1112 = vmatpush1.bf16.msra.mxu1 %v1151_v6  ;;  %v1181_v30 = vld [vmem:[%s1265_s19 + $0x70] sm:$0xff]   ;;  %v1182_v32 = vld [vmem:[%s1265_s19 + $0x78] sm:$0xff]  }
  0x1e   : > { %434 = vmatprep.subr.bf16.mxu0 %v1152_v7  ;;  %1105 = vmatprep.subr.bf16.mxu1 %v1152_v7 }
  0x21   : > { %435 = vmatpush1.bf16.msra.mxu0 %v1154_v8  ;;  %1113 = vmatpush1.bf16.msra.mxu1 %v1154_v8 }
  0x22   : > { %436 = vmatprep.subr.bf16.mxu0 %v1155_v9  ;;  %1106 = vmatprep.subr.bf16.mxu1 %v1155_v9 }
  0x25   : > { %437 = vmatpush1.bf16.msra.mxu0 %v1157_v10  ;;  %1114 = vmatpush1.bf16.msra.mxu1 %v1157_v10 }
  0x26   : > { %438 = vmatprep.subr.bf16.mxu0 %v1158_v11  ;;  %1107 = vmatprep.subr.bf16.mxu1 %v1158_v11 }
  0x29   : > { %439 = vmatpush1.bf16.msra.mxu0 %v1160_v12  ;;  %1115 = vmatpush1.bf16.msra.mxu1 %v1160_v12 }
  0x2a   : > { %440 = vmatprep.subr.bf16.mxu0 %v1161_v13  ;;  %1108 = vmatprep.subr.bf16.mxu1 %v1161_v13 }
  0x2d   : > { %441 = vmatpush1.bf16.msra.mxu0 %v1163_v14  ;;  %1116 = vmatpush1.bf16.msra.mxu1 %v1163_v14 }
  0x2e   : > { %442 = vmatprep.subr.bf16.mxu0 %v1164_v15  ;;  %1109 = vmatprep.subr.bf16.mxu1 %v1164_v15 }
  0x31   : > { %443 = vmatpush1.bf16.msra.mxu0 %v1166_v16  ;;  %1117 = vmatpush1.bf16.msra.mxu1 %v1166_v16 }
  0x34   : > { %461 = vmatmul.mubr.bf16.vlgmr.msra.gmra.mrb[0].mxu0 %v1167_v17  ;;  %541 = vmatmul.mubr.bf16.vlgmr.msra.gmra.mrb[0].mxu1 %v1171_v18 }
  0x35   : > { %470 = vmatprep.mubr.bf16.mxu0 %v1211_v0  ;;  %550 = vmatprep.mubr.bf16.mxu1 %v1211_v0 }
  0x3c   : > { %471 = vmatmul.mubr.bf16.gmra.mrb[4].mxu0 %v1168_v19  ;;  %551 = vmatmul.mubr.bf16.gmra.mrb[4].mxu1 %v1173_v20 }
  0x3d   : > { %480 = vmatprep.mubr.bf16.mxu0 %v1211_v0  ;;  %560 = vmatprep.mubr.bf16.mxu1 %v1211_v0 }
  0x44   : > { %481 = vmatmul.mubr.bf16.gmra.mrb[8].mxu0 %v1169_v21  ;;  %561 = vmatmul.mubr.bf16.gmra.mrb[8].mxu1 %v1175_v22 }
  0x45   : > { %490 = vmatprep.mubr.bf16.mxu0 %v1211_v0  ;;  %570 = vmatprep.mubr.bf16.mxu1 %v1211_v0 }
  0x4c   : > { %491 = vmatmul.mubr.bf16.gmra.mrb[12].mxu0 %v1170_v23  ;;  %571 = vmatmul.mubr.bf16.gmra.mrb[12].mxu1 %v1177_v24 }
  0x4d   : > { %500 = vmatprep.mubr.bf16.mxu0 %v1211_v0  ;;  %580 = vmatprep.mubr.bf16.mxu1 %v1211_v0 }
  0x54   : > { %501 = vmatmul.mubr.bf16.gmra.mrb[16].mxu0 %v1172_v25  ;;  %581 = vmatmul.mubr.bf16.gmra.mrb[16].mxu1 %v1179_v26 }
  0x55   : > { %510 = vmatprep.mubr.bf16.mxu0 %v1211_v0  ;;  %590 = vmatprep.mubr.bf16.mxu1 %v1211_v0 }
  0x5c   : > { %511 = vmatmul.mubr.bf16.gmra.mrb[20].mxu0 %v1174_v27  ;;  %591 = vmatmul.mubr.bf16.gmra.mrb[20].mxu1 %v1180_v28 }
  0x5d   : > { %520 = vmatprep.mubr.bf16.mxu0 %v1211_v0  ;;  %600 = vmatprep.mubr.bf16.mxu1 %v1211_v0 }
  0x64   : > { %521 = vmatmul.mubr.bf16.gmra.mrb[24].mxu0 %v1176_v29  ;;  %601 = vmatmul.mubr.bf16.gmra.mrb[24].mxu1 %v1181_v30 }
  0x65   : > { %530 = vmatprep.mubr.bf16.mxu0 %v1211_v0  ;;  %610 = vmatprep.mubr.bf16.mxu1 %v1211_v0 }
  0x6c   : > { %531 = vmatmul.mubr.bf16.gmra.mrb[28].mxu0 %v1178_v31  ;;  %611 = vmatmul.mubr.bf16.gmra.mrb[28].mxu1 %v1182_v32 }
 0x107   : > { %v462_v33 = vpop.f32.mrb[0].mxu0  ;;  %v1306_v34 = vpop.f32.mrb[0].mxu1 }
 0x108   : > { %v464_v35 = vpop.f32.mrb[1].mxu0  ;;  %v1308_v36 = vpop.f32.mrb[1].mxu1  ;;  %v1328_v53 = vmax.f32 %v462_v33, 0.0 }
 0x109   : > { %v466_v37 = vpop.f32.mrb[2].mxu0  ;;  %v1310_v38 = vpop.f32.mrb[2].mxu1  ;;  %v1334_v57 = vmax.f32 %v464_v35, 0.0 }
 0x10a   : > { %v468_v39 = vpop.f32.mrb[3].mxu0  ;;  %v1312_v40 = vpop.f32.mrb[3].mxu1  ;;  %v1322_v49 = vmax.f32 %v466_v37, 0.0  ;;  %v685_v1 = vmul.f32 %v1328_v53, %v1328_v53 }
 0x10b   : > { %v1324_v50 = vmax.f32 %v468_v39, 0.0  ;;  %v686_v4 = vmul.f32 %v1334_v57, %v1334_v57 }
 0x10c   : > { %v687_v61 = vmul.f32 %v1322_v49, %v1322_v49 }
 0x10d   : > { %1859 = vst [vmem:[#allocation2_spill] sm:$0xff] %v1324_v50  ;;  %v688_v0 = vmul.f32 %v1324_v50, %v1324_v50 }
 0x10e   : > { %v749_v7 = vadd.f32 %v687_v61, %v685_v1 }
 0x10f   : > { %v472_v41 = vpop.f32.mrb[4].mxu0  ;;  %v1314_v42 = vpop.f32.mrb[4].mxu1  ;;  %v786_v9 = vadd.f32 %v688_v0, %v686_v4 }
 0x110   : > { %v474_v43 = vpop.f32.mrb[5].mxu0  ;;  %v1316_v44 = vpop.f32.mrb[5].mxu1  ;;  %v1330_v54 = vmax.f32 %v472_v41, 0.0 }
 0x111   : > { %v476_v45 = vpop.f32.mrb[6].mxu0  ;;  %v1318_v46 = vpop.f32.mrb[6].mxu1  ;;  %v1336_v58 = vmax.f32 %v474_v43, 0.0 }
 0x112   : > { %v478_v47 = vpop.f32.mrb[7].mxu0  ;;  %v1320_v48 = vpop.f32.mrb[7].mxu1  ;;  %v689_v2 = vmul.f32 %v1330_v54, %v1330_v54  ;;  %v1350_v3 = vmax.f32 %v476_v45, 0.0 }
 0x113   : > { %1860 = vst [vmem:[#allocation3_spill] sm:$0xff] %v1336_v58  ;;  %v690_v5 = vmul.f32 %v1336_v58, %v1336_v58  ;;  %v1356_v6 = vmax.f32 %v478_v47, 0.0 }
 0x114   : > { %v750_v13 = vadd.f32 %v749_v7, %v689_v2  ;;  %v691_v14 = vmul.f32 %v1350_v3, %v1350_v3 }
 0x115   : > { %1861 = vst [vmem:[#allocation4_spill] sm:$0xff] %v1356_v6  ;;  %v787_v17 = vadd.f32 %v786_v9, %v690_v5  ;;  %v692_v18 = vmul.f32 %v1356_v6, %v1356_v6 }
 0x116   : > { %v751_v27 = vadd.f32 %v750_v13, %v691_v14 }
 0x117   : > { %v482_v51 = vpop.f32.mrb[8].mxu0  ;;  %v1326_v52 = vpop.f32.mrb[8].mxu1  ;;  %v788_v29 = vadd.f32 %v787_v17, %v692_v18 }
 0x118   : > { %v484_v55 = vpop.f32.mrb[9].mxu0  ;;  %v1332_v56 = vpop.f32.mrb[9].mxu1  ;;  %v1358_v8 = vmax.f32 %v482_v51, 0.0 }
 0x119   : > { %v486_v59 = vpop.f32.mrb[10].mxu0  ;;  %v1338_v60 = vpop.f32.mrb[10].mxu1  ;;  %v1360_v10 = vmax.f32 %v484_v55, 0.0 }
 0x11a   : > { %v488_v62 = vpop.f32.mrb[11].mxu0  ;;  %v1342_v63 = vpop.f32.mrb[11].mxu1  ;;  %v693_v21 = vmul.f32 %v1358_v8, %v1358_v8  ;;  %v1374_v22 = vmax.f32 %v486_v59, 0.0 }
 0x11b   : > { %1862 = vst [vmem:[#allocation5_spill] sm:$0xff] %v1360_v10  ;;  %v694_v25 = vmul.f32 %v1360_v10, %v1360_v10  ;;  %v1380_v26 = vmax.f32 %v488_v62, 0.0 }
 0x11c   : > { %v752_v31 = vadd.f32 %v751_v27, %v693_v21  ;;  %v695_v32 = vmul.f32 %v1374_v22, %v1374_v22 }
 0x11d   : > { %1863 = vst [vmem:[#allocation6_spill] sm:$0xff] %v1380_v26  ;;  %v789_v33 = vadd.f32 %v788_v29, %v694_v25  ;;  %v696_v35 = vmul.f32 %v1380_v26, %v1380_v26 }
 0x11e   : > { %v753_v62 = vadd.f32 %v752_v31, %v695_v32 }
 0x11f   : > { %v492_v11 = vpop.f32.mrb[12].mxu0  ;;  %v1362_v12 = vpop.f32.mrb[12].mxu1  ;;  %v790_v4 = vadd.f32 %v789_v33, %v696_v35 }
 0x120   : > { %v494_v15 = vpop.f32.mrb[13].mxu0  ;;  %v1366_v16 = vpop.f32.mrb[13].mxu1  ;;  %v1382_v28 = vmax.f32 %v492_v11, 0.0 }
 0x121   : > { %v496_v19 = vpop.f32.mrb[14].mxu0  ;;  %v1370_v20 = vpop.f32.mrb[14].mxu1  ;;  %v1384_v30 = vmax.f32 %v494_v15, 0.0 }
 0x122   : > { %v498_v23 = vpop.f32.mrb[15].mxu0  ;;  %v1376_v24 = vpop.f32.mrb[15].mxu1  ;;  %v697_v41 = vmul.f32 %v1382_v28, %v1382_v28  ;;  %v1394_v43 = vmax.f32 %v496_v19, 0.0 }
 0x123   : > { %1864 = vst [vmem:[#allocation7_spill] sm:$0xff] %v1384_v30  ;;  %v698_v51 = vmul.f32 %v1384_v30, %v1384_v30  ;;  %v1400_v55 = vmax.f32 %v498_v23, 0.0 }
 0x124   : > { %v754_v7 = vadd.f32 %v753_v62, %v697_v41  ;;  %v699_v9 = vmul.f32 %v1394_v43, %v1394_v43 }
 0x125   : > { %1865 = vst [vmem:[#allocation8_spill] sm:$0xff] %v1400_v55  ;;  %v791_v11 = vadd.f32 %v790_v4, %v698_v51  ;;  %v700_v13 = vmul.f32 %v1400_v55, %v1400_v55 }
 0x126   : > { %v755_v23 = vadd.f32 %v754_v7, %v699_v9 }
 0x127   : > { %v502_v37 = vpop.f32.mrb[16].mxu0  ;;  %v1390_v39 = vpop.f32.mrb[16].mxu1  ;;  %v792_v31 = vadd.f32 %v791_v11, %v700_v13 }
 0x128   : > { %v504_v45 = vpop.f32.mrb[17].mxu0  ;;  %v1396_v47 = vpop.f32.mrb[17].mxu1  ;;  %v1404_v0 = vmax.f32 %v502_v37, 0.0 }
 0x129   : > { %v506_v59 = vpop.f32.mrb[18].mxu0  ;;  %v1402_v61 = vpop.f32.mrb[18].mxu1  ;;  %v1408_v5 = vmax.f32 %v504_v45, 0.0 }
 0x12a   : > { %v508_v1 = vpop.f32.mrb[19].mxu0  ;;  %v1406_v2 = vpop.f32.mrb[19].mxu1  ;;  %v701_v14 = vmul.f32 %v1404_v0, %v1404_v0  ;;  %v1416_v15 = vmax.f32 %v506_v59, 0.0 }
 0x12b   : > { %1866 = vst [vmem:[#allocation9_spill] sm:$0xff] %v1408_v5  ;;  %v702_v17 = vmul.f32 %v1408_v5, %v1408_v5  ;;  %v1420_v18 = vmax.f32 %v508_v1, 0.0 }
 0x12c   : > { %v756_v37 = vadd.f32 %v755_v23, %v701_v14  ;;  %v703_v41 = vmul.f32 %v1416_v15, %v1416_v15 }
 0x12d   : > { %1867 = vst [vmem:[#allocation10_spill] sm:$0xff] %v1420_v18  ;;  %v793_v59 = vadd.f32 %v792_v31, %v702_v17  ;;  %v704_v62 = vmul.f32 %v1420_v18, %v1420_v18 }
 0x12e   : > { %v757_v11 = vadd.f32 %v756_v37, %v703_v41 }
 0x12f   : > { %v512_v19 = vpop.f32.mrb[20].mxu0  ;;  %v1422_v21 = vpop.f32.mrb[20].mxu1  ;;  %v794_v13 = vadd.f32 %v793_v59, %v704_v62 }
 0x130   : > { %v1424_v25 = vmax.f32 %v512_v19, 0.0  ;;  %v514_v27 = vpop.f32.mrb[21].mxu0  ;;  %v1426_v29 = vpop.f32.mrb[21].mxu1 }
 0x131   : > { %v1428_v32 = vmax.f32 %v514_v27, 0.0  ;;  %v516_v33 = vpop.f32.mrb[22].mxu0  ;;  %v1430_v35 = vpop.f32.mrb[22].mxu1 }
 0x132   : > { %v518_v45 = vpop.f32.mrb[23].mxu0  ;;  %v1434_v51 = vpop.f32.mrb[23].mxu1  ;;  %v705_v1 = vmul.f32 %v1424_v25, %v1424_v25  ;;  %v1440_v4 = vmax.f32 %v516_v33, 0.0 }
 0x133   : > { %1868 = vst [vmem:[#allocation11_spill] sm:$0xff] %v1428_v32  ;;  %v706_v7 = vmul.f32 %v1428_v32, %v1428_v32  ;;  %v1444_v9 = vmax.f32 %v518_v45, 0.0 }
 0x134   : > { %v758_v23 = vadd.f32 %v757_v11, %v705_v1  ;;  %v707_v17 = vmul.f32 %v1440_v4, %v1440_v4 }
 0x135   : > { %1869 = vst [vmem:[#allocation12_spill] sm:$0xff] %v1444_v9  ;;  %v795_v33 = vadd.f32 %v794_v13, %v706_v7  ;;  %v708_v32 = vmul.f32 %v1444_v9, %v1444_v9 }
 0x136   : > { %v759_v13 = vadd.f32 %v758_v23, %v707_v17  ;;  %v1485_v17 = vmax.f32 %v1306_v34, 0.0  ;;  %v1501_v34 = vmax.f32 %v1310_v38, 0.0 }
 0x137   : > { %v522_v14 = vpop.f32.mrb[24].mxu0  ;;  %v1446_v19 = vpop.f32.mrb[24].mxu1  ;;  %v796_v9 = vadd.f32 %v795_v33, %v708_v32 }
 0x138   : > { %v1450_v27 = vmax.f32 %v522_v14, 0.0  ;;  %v524_v31 = vpop.f32.mrb[25].mxu0  ;;  %v1452_v18 = vpop.f32.mrb[25].mxu1 }
 0x139   : > { %v1456_v45 = vmax.f32 %v524_v31, 0.0  ;;  %v526_v37 = vpop.f32.mrb[26].mxu0  ;;  %v1458_v41 = vpop.f32.mrb[26].mxu1 }
 0x13a   : > { %v709_v59 = vmul.f32 %v1450_v27, %v1450_v27  ;;  %v1462_v62 = vmax.f32 %v526_v37, 0.0  ;;  %v528_v1 = vpop.f32.mrb[27].mxu0  ;;  %v1464_v11 = vpop.f32.mrb[27].mxu1 }
 0x13b   : > { %1870 = vst [vmem:[#allocation13_spill] sm:$0xff] %v1456_v45  ;;  %v710_v14 = vmul.f32 %v1456_v45, %v1456_v45  ;;  %v1468_v7 = vmax.f32 %v528_v1, 0.0 }
 0x13c   : > { %v760_v31 = vadd.f32 %v759_v13, %v709_v59  ;;  %v711_v5 = vmul.f32 %v1462_v62, %v1462_v62 }
 0x13d   : > { %1871 = vst [vmem:[#allocation14_spill] sm:$0xff] %v1468_v7  ;;  %v797_v55 = vadd.f32 %v796_v9, %v710_v14  ;;  %v712_v30 = vmul.f32 %v1468_v7, %v1468_v7 }
 0x13e   : > { %v761_v9 = vadd.f32 %v760_v31, %v711_v5 }
 0x13f   : > { %v532_v37 = vpop.f32.mrb[28].mxu0  ;;  %v1474_v26 = vpop.f32.mrb[28].mxu1 }
 0x140   : > { %v1476_v10 = vmax.f32 %v532_v37, 0.0  ;;  %v534_v6 = vpop.f32.mrb[29].mxu0  ;;  %v1478_v58 = vpop.f32.mrb[29].mxu1  ;;  %v1494_v37 = vmax.f32 %v1308_v36, 0.0 }
 0x141   : > { %v1480_v1 = vmax.f32 %v534_v6, 0.0  ;;  %v536_v23 = vpop.f32.mrb[30].mxu0  ;;  %v1482_v32 = vpop.f32.mrb[30].mxu1  ;;  %v798_v6 = vadd.f32 %v797_v55, %v712_v30  ;;  %v717_v30 = vmul.f32 %v1485_v17, %v1485_v17  ;;  %v1513_v55 = vmax.f32 %v1314_v42, 0.0 }
 0x142   : > { %v713_v33 = vmul.f32 %v1476_v10, %v1476_v10  ;;  %v1489_v59 = vmax.f32 %v536_v23, 0.0  ;;  %v538_v14 = vpop.f32.mrb[31].mxu0  ;;  %v1491_v13 = vpop.f32.mrb[31].mxu1  ;;  %v1506_v23 = vmax.f32 %v1312_v40, 0.0  ;;  %v718_v38 = vmul.f32 %v1494_v37, %v1494_v37 }
 0x143   : > { %v714_v7 = vmul.f32 %v1480_v1, %v1480_v1  ;;  %v1498_v45 = vmax.f32 %v538_v14, 0.0  ;;  %v719_v40 = vmul.f32 %v1501_v34, %v1501_v34  ;;  %v1528_v42 = vmax.f32 %v1320_v48, 0.0 }
 0x144   : > { %v762_v5 = vadd.f32 %v761_v9, %v713_v33  ;;  %v715_v31 = vmul.f32 %v1489_v59, %v1489_v59  ;;  %v1518_v9 = vmax.f32 %v1316_v44, 0.0  ;;  %v1533_v44 = vmax.f32 %v1326_v52, 0.0 }
 0x145   : > { %1872 = vst [vmem:[#allocation15_spill] sm:$0xff] %v1498_v45  ;;  %v799_v50 = vadd.f32 %v798_v6, %v714_v7  ;;  %v716_v36 = vmul.f32 %v1498_v45, %v1498_v45  ;;  %v1523_v7 = vmax.f32 %v1318_v46, 0.0  ;;  %v720_v45 = vmul.f32 %v1506_v23, %v1506_v23 }
 0x146   : > { %v763_v14 = vadd.f32 %v762_v5, %v715_v31  ;;  %v721_v31 = vmul.f32 %v1513_v55, %v1513_v55  ;;  %v1538_v46 = vmax.f32 %v1332_v56, 0.0  ;;  %v1543_v48 = vmax.f32 %v1338_v60, 0.0 }
 0x147   : > { %v800_v33 = vadd.f32 %v799_v50, %v716_v36  ;;  %v722_v36 = vmul.f32 %v1518_v9, %v1518_v9  ;;  %v1548_v52 = vmax.f32 %v1342_v63, 0.0  ;;  %v1553_v56 = vmax.f32 %v1362_v12, 0.0 }
 0x148   : > { %v764_v6 = vadd.f32 %v763_v14, %v717_v30  ;;  %v723_v14 = vmul.f32 %v1523_v7, %v1523_v7  ;;  %v1558_v60 = vmax.f32 %v1366_v16, 0.0  ;;  %v1563_v63 = vmax.f32 %v1370_v20, 0.0 }
 0x149   : > { %v801_v5 = vadd.f32 %v800_v33, %v718_v38  ;;  %v724_v33 = vmul.f32 %v1528_v42, %v1528_v42  ;;  %v1568_v12 = vmax.f32 %v1376_v24, 0.0  ;;  %v1573_v16 = vmax.f32 %v1390_v39, 0.0 }
 0x14a   : > { %v765_v50 = vadd.f32 %v764_v6, %v719_v40  ;;  %v725_v6 = vmul.f32 %v1533_v44, %v1533_v44  ;;  %v1578_v20 = vmax.f32 %v1396_v47, 0.0 }
 0x14b   : > { %v802_v30 = vadd.f32 %v801_v5, %v720_v45  ;;  %v726_v5 = vmul.f32 %v1538_v46, %v1538_v46 }
 0x14c   : > { %v766_v38 = vadd.f32 %v765_v50, %v721_v31  ;;  %v727_v50 = vmul.f32 %v1543_v48, %v1543_v48  ;;  %1873 = vst [vmem:[#allocation16_spill] sm:$0xff] %v1578_v20 }
 0x14d   : > { %v803_v40 = vadd.f32 %v802_v30, %v722_v36  ;;  %v728_v30 = vmul.f32 %v1548_v52, %v1548_v52 }
 0x14e   : > { %v767_v45 = vadd.f32 %v766_v38, %v723_v14  ;;  %v729_v38 = vmul.f32 %v1553_v56, %v1553_v56 }
 0x14f   : > { %v804_v31 = vadd.f32 %v803_v40, %v724_v33  ;;  %v730_v40 = vmul.f32 %v1558_v60, %v1558_v60 }
 0x150   : > { %v768_v36 = vadd.f32 %v767_v45, %v725_v6  ;;  %v731_v45 = vmul.f32 %v1563_v63, %v1563_v63 }
 0x151   : > { %v805_v14 = vadd.f32 %v804_v31, %v726_v5  ;;  %v1583_v5 = vmax.f32 %v1402_v61, 0.0  ;;  %v732_v31 = vmul.f32 %v1568_v12, %v1568_v12  ;;  %v1598_v61 = vmax.f32 %v1426_v29, 0.0 }
 0x152   : > { %v769_v33 = vadd.f32 %v768_v36, %v727_v50  ;;  %v1588_v50 = vmax.f32 %v1406_v2, 0.0  ;;  %v733_v36 = vmul.f32 %v1573_v16, %v1573_v16  ;;  %v1603_v2 = vmax.f32 %v1430_v35, 0.0 }
 0x153   : > { %v806_v6 = vadd.f32 %v805_v14, %v728_v30  ;;  %v1593_v30 = vmax.f32 %v1422_v21, 0.0  ;;  %v734_v14 = vmul.f32 %v1578_v20, %v1578_v20  ;;  %1875 = vst [vmem:[#allocation18_spill] sm:$0xff] %v1598_v61  ;;  %v1608_v21 = vmax.f32 %v1434_v51, 0.0 }
 0x154   : > { %v770_v24 = vadd.f32 %v769_v33, %v729_v38  ;;  %1874 = vst [vmem:[#allocation17_spill] sm:$0xff] %v1588_v50  ;;  %v1613_v29 = vmax.f32 %v1446_v19, 0.0  ;;  %v1618_v35 = vmax.f32 %v1452_v18, 0.0  ;;  %v1623_v51 = vmax.f32 %v1458_v41, 0.0 }
 0x155   : > { %v807_v39 = vadd.f32 %v806_v6, %v730_v40  ;;  %v735_v40 = vmul.f32 %v1583_v5, %v1583_v5  ;;  %1876 = vst [vmem:[#allocation19_spill] sm:$0xff] %v1608_v21  ;;  %v740_v19 = vmul.f32 %v1608_v21, %v1608_v21  ;;  %v1634_v18 = vmax.f32 %v1478_v58, 0.0 }
 0x156   : > { %v771_v47 = vadd.f32 %v770_v24, %v731_v45  ;;  %v736_v45 = vmul.f32 %v1588_v50, %v1588_v50  ;;  %1877 = vst [vmem:[#allocation20_spill] sm:$0xff] %v1618_v35  ;;  %v742_v41 = vmul.f32 %v1618_v35, %v1618_v35 }
 0x157   : > { %v808_v38 = vadd.f32 %v807_v39, %v732_v31  ;;  %v737_v31 = vmul.f32 %v1593_v30, %v1593_v30  ;;  %1879 = vst [vmem:[#allocation22_spill] sm:$0xff] %v1634_v18 }
 0x158   : > { %v772_v33 = vadd.f32 %v771_v47, %v733_v36  ;;  %v738_v36 = vmul.f32 %v1598_v61, %v1598_v61 }
 0x159   : > { %v809_v6 = vadd.f32 %v808_v38, %v734_v14  ;;  %v739_v14 = vmul.f32 %v1603_v2, %v1603_v2  ;;  %v1626_v38 = vmax.f32 %v1474_v26, 0.0 }
 0x15a   : > { %v773_v24 = vadd.f32 %v772_v33, %v735_v40  ;;  %v1631_v40 = vmax.f32 %v1464_v11, 0.0  ;;  %v1645_v11 = vmax.f32 %v1482_v32, 0.0 }
 0x15b   : > { %v810_v39 = vadd.f32 %v809_v6, %v736_v45  ;;  %v741_v45 = vmul.f32 %v1613_v29, %v1613_v29 }
 0x15c   : > { %v774_v47 = vadd.f32 %v773_v24, %v737_v31  ;;  %1878 = vst [vmem:[#allocation21_spill] sm:$0xff] %v1631_v40  ;;  %v743_v31 = vmul.f32 %v1623_v51, %v1623_v51 }
 0x15d   : > { %v811_v33 = vadd.f32 %v810_v39, %v738_v36  ;;  %v745_v39 = vmul.f32 %v1626_v38, %v1626_v38  ;;  %v744_v36 = vmul.f32 %v1631_v40, %v1631_v40 }
 0x15e   : > { %v775_v6 = vadd.f32 %v774_v47, %v739_v14  ;;  %v746_v47 = vmul.f32 %v1634_v18, %v1634_v18  ;;  %v1652_v14 = vmax.f32 %v1491_v13, 0.0 }
 0x15f   : > { %v812_v24 = vadd.f32 %v811_v33, %v740_v19 }
 0x160   : > { %v776_v26 = vadd.f32 %v775_v6, %v741_v45  ;;  %v747_v45 = vmul.f32 %v1645_v11, %v1645_v11  ;;  %v748_v32 = vmul.f32 %v1652_v14, %v1652_v14 }
 0x161   : > { %v813_v58 = vadd.f32 %v812_v24, %v742_v41 }
 0x162   : > { %v777_v33 = vadd.f32 %v776_v26, %v743_v31 }
 0x163   : > { %v814_v19 = vadd.f32 %v813_v58, %v744_v36 }
 0x164   : > { %v778_v6 = vadd.f32 %v777_v33, %v745_v39 }
 0x165   : > { %v815_v35 = vadd.f32 %v814_v19, %v746_v47 }
 0x166   : > { %v779_v24 = vadd.f32 %v778_v6, %v747_v45  ;;  %v1883_v45 = vld [vmem:[#allocation5_spill] sm:$0xff] }
 0x167   : > { %v816_v41 = vadd.f32 %v815_v35, %v748_v32  ;;  %v1884_v32 = vld [vmem:[#allocation6_spill] sm:$0xff] }
 0x168   : > { %v780_v21 = vrot.slane %v779_v24, 4 }
 0x169   : > { %v817_v40 = vrot.slane %v816_v41, 4 }
 0x16a   : > { %v781_v61 = vadd.f32 %v780_v21, %v779_v24 }
 0x16b   : > { %v818_v18 = vadd.f32 %v817_v40, %v816_v41  ;;  %v1885_v41 = vld [vmem:[#allocation7_spill] sm:$0xff] }
 0x16c   : > { %v782_v50 = vrot.slane %v781_v61, 2 }
 0x16d   : > { %v819_v13 = vrot.slane %v818_v18, 2 }
 0x16e   : > { %v783_v20 = vadd.f32 %v782_v50, %v781_v61 }
 0x16f   : > { %v820_v26 = vadd.f32 %v819_v13, %v818_v18 }
 0x170   : > { %v784_v31 = vrot.slane %v783_v20, 1 }
 0x171   : > { %v821_v39 = vrot.slane %v820_v26, 1 }
 0x172   : > { %v785_v58 = vadd.f32 %v784_v31, %v783_v20 }
 0x173   : > { %v822_v33 = vadd.f32 %v821_v39, %v820_v26  ;;  %v1886_v26 = vld [vmem:[#allocation8_spill] sm:$0xff]  ;;  %v1887_v39 = vld [vmem:[#allocation9_spill] sm:$0xff] }
 0x174   : > { %v823_v36 = vadd.f32 1e-06, %v785_v58 }
 0x175   : > { %v824_v47 = vadd.f32 1e-06, %v822_v33 }
 0x176   : > { %1183 = vrsqrt.f32 %v823_v36  ;;  %v1888_v36 = vld [vmem:[#allocation10_spill] sm:$0xff] }
 0x177   : > { %1185 = vrsqrt.f32 %v824_v47  ;;  %v1889_v47 = vld [vmem:[#allocation11_spill] sm:$0xff] }
 0x180   : > { %v1184_v19 = vpop.eup %1183 }
 0x181   : > { %v827_v50 = vmul.f32 %v1184_v19, %v1328_v53  ;;  %v829_v20 = vmul.f32 %v1184_v19, %v1322_v49  ;;  %v831_v61 = vmul.f32 %v1184_v19, %v1330_v54  ;;  %v833_v21 = vmul.f32 %v1184_v19, %v1350_v3 }
 0x182   : > { %v835_v35 = vmul.f32 %v1184_v19, %v1358_v8  ;;  %v837_v40 = vmul.f32 %v1184_v19, %v1374_v22  ;;  %v839_v18 = vmul.f32 %v1184_v19, %v1382_v28  ;;  %v841_v6 = vmul.f32 %v1184_v19, %v1394_v43 }
 0x183   : > { %v843_v53 = vmul.f32 %v1184_v19, %v1404_v0  ;;  %v845_v49 = vmul.f32 %v1184_v19, %v1416_v15  ;;  %v847_v54 = vmul.f32 %v1184_v19, %v1424_v25  ;;  %v849_v3 = vmul.f32 %v1184_v19, %v1440_v4  ;;  %891 = vst [vmem:[%s1662_s23] sm:$0xff] %v827_v50  ;;  %v1890_v50 = vld [vmem:[#allocation12_spill] sm:$0xff] }
 0x184   : > { %893 = vst [vmem:[%s1662_s23 + $0x10] sm:$0xff] %v829_v20  ;;  %895 = vst [vmem:[%s1662_s23 + $0x20] sm:$0xff] %v831_v61  ;;  %v851_v8 = vmul.f32 %v1184_v19, %v1450_v27  ;;  %v853_v22 = vmul.f32 %v1184_v19, %v1462_v62  ;;  %v855_v28 = vmul.f32 %v1184_v19, %v1476_v10  ;;  %v1696_v10 = vpop.eup %1185  ;;  %v1891_v61 = vld [vmem:[#allocation13_spill] sm:$0xff] }
 0x185   : > { %897 = vst [vmem:[%s1662_s23 + $0x30] sm:$0xff] %v833_v21  ;;  %v857_v43 = vmul.f32 %v1184_v19, %v1489_v59  ;;  %899 = vst [vmem:[%s1662_s23 + $0x40] sm:$0xff] %v835_v35  ;;  %v859_v0 = vmul.f32 %v1184_v19, %v1485_v17  ;;  %v861_v15 = vmul.f32 %v1184_v19, %v1501_v34  ;;  %v1892_v35 = vld [vmem:[#allocation14_spill] sm:$0xff] }
 0x186   : > { %901 = vst [vmem:[%s1662_s23 + $0x50] sm:$0xff] %v837_v40  ;;  %903 = vst [vmem:[%s1662_s23 + $0x60] sm:$0xff] %v839_v18  ;;  %v863_v25 = vmul.f32 %v1184_v19, %v1513_v55  ;;  %v865_v4 = vmul.f32 %v1184_v19, %v1523_v7  ;;  %v867_v27 = vmul.f32 %v1184_v19, %v1533_v44 }
 0x187   : > { %905 = vst [vmem:[%s1662_s23 + $0x70] sm:$0xff] %v841_v6  ;;  %907 = vst [vmem:[%s1662_s23 + $0x80] sm:$0xff] %v843_v53  ;;  %v869_v62 = vmul.f32 %v1184_v19, %v1543_v48  ;;  %v871_v17 = vmul.f32 %v1184_v19, %v1553_v56  ;;  %v873_v59 = vmul.f32 %v1184_v19, %v1563_v63  ;;  %v1893_v6 = vld [vmem:[#allocation15_spill] sm:$0xff] }
 0x188   : > { %909 = vst [vmem:[%s1662_s23 + $0x90] sm:$0xff] %v845_v49  ;;  %911 = vst [vmem:[%s1662_s23 + $0xa0] sm:$0xff] %v847_v54  ;;  %v875_v34 = vmul.f32 %v1184_v19, %v1573_v16  ;;  %v877_v55 = vmul.f32 %v1184_v19, %v1583_v5  ;;  %v879_v7 = vmul.f32 %v1184_v19, %v1593_v30  ;;  %v1880_v30 = vld [vmem:[#allocation2_spill] sm:$0xff] }
 0x189   : > { %913 = vst [vmem:[%s1662_s23 + $0xb0] sm:$0xff] %v849_v3  ;;  %915 = vst [vmem:[%s1662_s23 + $0xc0] sm:$0xff] %v851_v8  ;;  %v881_v44 = vmul.f32 %v1184_v19, %v1603_v2  ;;  %v883_v48 = vmul.f32 %v1184_v19, %v1613_v29  ;;  %v885_v56 = vmul.f32 %v1184_v19, %v1623_v51  ;;  %v1881_v29 = vld [vmem:[#allocation3_spill] sm:$0xff]  ;;  %v1894_v8 = vld [vmem:[#allocation16_spill] sm:$0xff] }
 0x18a   : > { %917 = vst [vmem:[%s1662_s23 + $0xd0] sm:$0xff] %v853_v22  ;;  %919 = vst [vmem:[%s1662_s23 + $0xe0] sm:$0xff] %v855_v28  ;;  %v887_v63 = vmul.f32 %v1184_v19, %v1626_v38  ;;  %v889_v16 = vmul.f32 %v1184_v19, %v1645_v11  ;;  %v828_v5 = vmul.f32 %v1696_v10, %v1334_v57  ;;  %v1882_v38 = vld [vmem:[#allocation4_spill] sm:$0xff]  ;;  %v1895_v22 = vld [vmem:[#allocation17_spill] sm:$0xff] }
 0x18b   : > { %921 = vst [vmem:[%s1662_s23 + $0xf0] sm:$0xff] %v857_v43  ;;  %923 = vst [vmem:[%s1662_s23 + $0x100] sm:$0xff] %v859_v0  ;;  %v830_v2 = vmul.f32 %v1696_v10, %v1880_v30  ;;  %v832_v51 = vmul.f32 %v1696_v10, %v1881_v29  ;;  %v834_v11 = vmul.f32 %v1696_v10, %v1882_v38  ;;  %v1896_v28 = vld [vmem:[#allocation18_spill] sm:$0xff]  ;;  %v1898_v0 = vld [vmem:[#allocation20_spill] sm:$0xff] }
 0x18c   : > { %925 = vst [vmem:[%s1662_s23 + $0x110] sm:$0xff] %v861_v15  ;;  %927 = vst [vmem:[%s1662_s23 + $0x120] sm:$0xff] %v863_v25  ;;  %v836_v57 = vmul.f32 %v1696_v10, %v1883_v45  ;;  %v838_v24 = vmul.f32 %v1696_v10, %v1884_v32  ;;  %v840_v13 = vmul.f32 %v1696_v10, %v1885_v41  ;;  %v1899_v25 = vld [vmem:[#allocation21_spill] sm:$0xff] }
 0x18d   : > { %929 = vst [vmem:[%s1662_s23 + $0x130] sm:$0xff] %v865_v4  ;;  %931 = vst [vmem:[%s1662_s23 + $0x140] sm:$0xff] %v867_v27  ;;  %v842_v31 = vmul.f32 %v1696_v10, %v1886_v26  ;;  %v844_v58 = vmul.f32 %v1696_v10, %v1887_v39  ;;  %v846_v33 = vmul.f32 %v1696_v10, %v1888_v36  ;;  %v1900_v27 = vld [vmem:[#allocation22_spill] sm:$0xff] }
 0x18e   : > { %933 = vst [vmem:[%s1662_s23 + $0x150] sm:$0xff] %v869_v62  ;;  %935 = vst [vmem:[%s1662_s23 + $0x160] sm:$0xff] %v871_v17  ;;  %v848_v19 = vmul.f32 %v1696_v10, %v1889_v47  ;;  %v850_v20 = vmul.f32 %v1696_v10, %v1890_v50  ;;  %v852_v21 = vmul.f32 %v1696_v10, %v1891_v61 }
 0x18f   : > { %937 = vst [vmem:[%s1662_s23 + $0x170] sm:$0xff] %v873_v59  ;;  %939 = vst [vmem:[%s1662_s23 + $0x180] sm:$0xff] %v875_v34  ;;  %v854_v40 = vmul.f32 %v1696_v10, %v1892_v35  ;;  %v856_v18 = vmul.f32 %v1696_v10, %v1480_v1  ;;  %v858_v53 = vmul.f32 %v1696_v10, %v1893_v6 }
 0x190   : > { %941 = vst [vmem:[%s1662_s23 + $0x190] sm:$0xff] %v877_v55  ;;  %943 = vst [vmem:[%s1662_s23 + $0x1a0] sm:$0xff] %v879_v7  ;;  %v860_v49 = vmul.f32 %v1696_v10, %v1494_v37  ;;  %v862_v54 = vmul.f32 %v1696_v10, %v1506_v23  ;;  %v864_v1 = vmul.f32 %v1696_v10, %v1518_v9 }
 0x191   : > { %945 = vst [vmem:[%s1662_s23 + $0x1b0] sm:$0xff] %v881_v44  ;;  %947 = vst [vmem:[%s1662_s23 + $0x1c0] sm:$0xff] %v883_v48  ;;  %v866_v3 = vmul.f32 %v1696_v10, %v1528_v42  ;;  %v868_v37 = vmul.f32 %v1696_v10, %v1538_v46  ;;  %v870_v23 = vmul.f32 %v1696_v10, %v1548_v52 }
 0x192   : > { %949 = vst [vmem:[%s1662_s23 + $0x1d0] sm:$0xff] %v885_v56  ;;  %951 = vst [vmem:[%s1662_s23 + $0x1e0] sm:$0xff] %v887_v63  ;;  %v872_v9 = vmul.f32 %v1696_v10, %v1558_v60  ;;  %v874_v42 = vmul.f32 %v1696_v10, %v1568_v12  ;;  %v876_v46 = vmul.f32 %v1696_v10, %v1894_v8  ;;  %v1897_v12 = vld [vmem:[#allocation19_spill] sm:$0xff] }
 0x193   : > { %953 = vst [vmem:[%s1662_s23 + $0x1f0] sm:$0xff] %v889_v16  ;;  %892 = vst [vmem:[%s1662_s23 + $0x8] sm:$0xff] %v828_v5  ;;  %v878_v52 = vmul.f32 %v1696_v10, %v1895_v22  ;;  %v880_v60 = vmul.f32 %v1696_v10, %v1896_v28  ;;  %v882_v43 = vmul.f32 %v1696_v10, %v1897_v12 }
 0x194   : > { %894 = vst [vmem:[%s1662_s23 + $0x18] sm:$0xff] %v830_v2  ;;  %896 = vst [vmem:[%s1662_s23 + $0x28] sm:$0xff] %v832_v51  ;;  %v884_v15 = vmul.f32 %v1696_v10, %v1898_v0  ;;  %v886_v4 = vmul.f32 %v1696_v10, %v1899_v25  ;;  %v888_v62 = vmul.f32 %v1696_v10, %v1900_v27 }
 0x195   : > { %898 = vst [vmem:[%s1662_s23 + $0x38] sm:$0xff] %v834_v11  ;;  %900 = vst [vmem:[%s1662_s23 + $0x48] sm:$0xff] %v836_v57  ;;  %v890_v17 = vmul.f32 %v1696_v10, %v1652_v14 }
 0x196   : > { %902 = vst [vmem:[%s1662_s23 + $0x58] sm:$0xff] %v838_v24  ;;  %904 = vst [vmem:[%s1662_s23 + $0x68] sm:$0xff] %v840_v13 }
 0x197   : > { %906 = vst [vmem:[%s1662_s23 + $0x78] sm:$0xff] %v842_v31  ;;  %908 = vst [vmem:[%s1662_s23 + $0x88] sm:$0xff] %v844_v58 }
 0x198   : > { %910 = vst [vmem:[%s1662_s23 + $0x98] sm:$0xff] %v846_v33  ;;  %912 = vst [vmem:[%s1662_s23 + $0xa8] sm:$0xff] %v848_v19 }
 0x199   : > { %914 = vst [vmem:[%s1662_s23 + $0xb8] sm:$0xff] %v850_v20  ;;  %916 = vst [vmem:[%s1662_s23 + $0xc8] sm:$0xff] %v852_v21 }
 0x19a   : > { %918 = vst [vmem:[%s1662_s23 + $0xd8] sm:$0xff] %v854_v40  ;;  %920 = vst [vmem:[%s1662_s23 + $0xe8] sm:$0xff] %v856_v18 }
 0x19b   : > { %922 = vst [vmem:[%s1662_s23 + $0xf8] sm:$0xff] %v858_v53  ;;  %924 = vst [vmem:[%s1662_s23 + $0x108] sm:$0xff] %v860_v49 }
 0x19c   : > { %926 = vst [vmem:[%s1662_s23 + $0x118] sm:$0xff] %v862_v54  ;;  %928 = vst [vmem:[%s1662_s23 + $0x128] sm:$0xff] %v864_v1 }
 0x19d   : > { %930 = vst [vmem:[%s1662_s23 + $0x138] sm:$0xff] %v866_v3  ;;  %932 = vst [vmem:[%s1662_s23 + $0x148] sm:$0xff] %v868_v37 }
 0x19e   : > { %934 = vst [vmem:[%s1662_s23 + $0x158] sm:$0xff] %v870_v23  ;;  %936 = vst [vmem:[%s1662_s23 + $0x168] sm:$0xff] %v872_v9 }
 0x19f   : > { %938 = vst [vmem:[%s1662_s23 + $0x178] sm:$0xff] %v874_v42  ;;  %940 = vst [vmem:[%s1662_s23 + $0x188] sm:$0xff] %v876_v46 }
 0x1a0   : > { %942 = vst [vmem:[%s1662_s23 + $0x198] sm:$0xff] %v878_v52  ;;  %944 = vst [vmem:[%s1662_s23 + $0x1a8] sm:$0xff] %v880_v60 }
 0x1a1   : > { %946 = vst [vmem:[%s1662_s23 + $0x1b8] sm:$0xff] %v882_v43  ;;  %948 = vst [vmem:[%s1662_s23 + $0x1c8] sm:$0xff] %v884_v15 }
 0x1a2   : > { %950 = vst [vmem:[%s1662_s23 + $0x1d8] sm:$0xff] %v886_v4  ;;  %952 = vst [vmem:[%s1662_s23 + $0x1e8] sm:$0xff] %v888_v62 }
 0x1a3   : > { %954 = vst [vmem:[%s1662_s23 + $0x1f8] sm:$0xff] %v890_v17 }
 0x1a4 PF: > { %s12_s11 = sadd.s32 1, %s1209_s11   ;;  %s1901_s9 = smov %s1205_s10 }
 0x1a5   : > { %p9_p5 = scmp.ge.s32.totalorder %s12_s11, 4   ;;  %s1902_s10 = smov %s1904_s12 }
 0x1a7   :  { %11 = sbr.rel (!%p9_p5) target bundleno = 2 (0x2), region = 61 }

</bundles_post_ra>
